<compile_context>
chip_gen: v5e
topology: v5e:2x2
jax: 0.10.0
libtpu: 0.0.40
codegen_flags: <defaults>
</compile_context>

<pallas_src>
import functools

import jax
import jax.numpy as jnp
from jax.experimental import pallas as pl
from jax.experimental.pallas import tpu as pltpu


INPUT_DIM = 4
HIDDEN = 64
OUTPUT_DIM = 2

_SLAB_ROWS = HIDDEN + 8          # rows 0:64 = W2, row 64 = w_diff, 65:72 = 0
_PCOLS = 8                       # cols 0:4 = W1, 4 = b1, 5 = b2, 6 = b_diff, 7 = 0


def _round_up(n, m):
    return ((n + m - 1) // m) * m


def policy_net_kernel(x_ref, w_ref, p_ref, o_ref, *, compute_dtype):
    # x_ref: (4, tb)  compute_dtype  -- features on sublanes, batch on lanes
    # w_ref: (72, 64) compute_dtype  -- rows 0:64 = W2[out,in], row 64 = w3[1]-w3[0]
    # p_ref: (64, 8)  float32        -- cols 0:4 = W1[out,in], 4 = b1, 5 = b2, [0,6]=b_diff
    # o_ref: (2, tb)  float32        -- softmax probabilities, lane-dense
    x = x_ref[...]                                           # (4, tb)
    w1 = p_ref[:, 0:INPUT_DIM].astype(compute_dtype)         # (64, 4)  tiny cast
    b1 = p_ref[:, INPUT_DIM:INPUT_DIM + 1]                   # (64, 1)  f32
    b2 = p_ref[:, INPUT_DIM + 1:INPUT_DIM + 2]               # (64, 1)  f32
    b_diff = p_ref[0:1, INPUT_DIM + 2:INPUT_DIM + 3]         # (1, 1)   f32

    # fc1 + ReLU: (64,4) @ (4,tb) -> (64,tb), f32 accumulation on the MXU.
    h1 = jnp.dot(w1, x, preferred_element_type=jnp.float32)
    h1 = jnp.maximum(h1 + b1, 0.0)

    # fc2 + ReLU: (64,64) @ (64,tb) -> (64,tb).
    h2 = jnp.dot(w_ref[0:HIDDEN, :], h1.astype(compute_dtype),
                 preferred_element_type=jnp.float32)
    h2 = jnp.maximum(h2 + b2, 0.0)

    # fc3 collapsed to the logit difference: (1,64) @ (64,tb) -> (1,tb).
    d = jnp.dot(w_ref[HIDDEN:HIDDEN + 1, :], h2.astype(compute_dtype),
                preferred_element_type=jnp.float32) + b_diff

    # 2-class softmax: one sigmoid (EUP), complement on the VPU, single
    # lane-dense store of the full (2, tb) block.
    p1 = jax.nn.sigmoid(d)                                   # P(action = 1)
    o_ref[...] = jnp.concatenate([1.0 - p1, p1], axis=0)


def pack_policy_net_params(params, weight_dtype=jnp.bfloat16):
    """Pack PyTorch-layout params ([out, in] weights) into the two kernel slabs.

    Do this ONCE per parameter set, outside the rollout loop.
    Returns (w_slab (72,64) weight_dtype, p_small (64,8) float32).
    """
    w1 = jnp.asarray(params["w1"], jnp.float32)              # (64, 4)
    w2 = jnp.asarray(params["w2"], jnp.float32)              # (64, 64)
    w3 = jnp.asarray(params["w3"], jnp.float32)              # (2, 64)
    b1 = jnp.asarray(params["b1"], jnp.float32).reshape(-1)  # (64,)
    b2 = jnp.asarray(params["b2"], jnp.float32).reshape(-1)  # (64,)
    b3 = jnp.asarray(params["b3"], jnp.float32).reshape(-1)  # (2,)

    w_diff = w3[1, :] - w3[0, :]                             # (64,)
    b_diff = b3[1] - b3[0]                                   # scalar

    w_slab = jnp.zeros((_SLAB_ROWS, HIDDEN), jnp.float32)
    w_slab = w_slab.at[:HIDDEN, :].set(w2)
    w_slab = w_slab.at[HIDDEN, :].set(w_diff)
    w_slab = w_slab.astype(weight_dtype)                     # pre-cast (no per-step convert)

    p_small = jnp.zeros((HIDDEN, _PCOLS), jnp.float32)
    p_small = p_small.at[:, :INPUT_DIM].set(w1)
    p_small = p_small.at[:, INPUT_DIM].set(b1)
    p_small = p_small.at[:, INPUT_DIM + 1].set(b2)
    p_small = p_small.at[0, INPUT_DIM + 2].set(b_diff)
    return w_slab, p_small


def policy_net_forward(x, w_slab, p_small, *, batch_tile=2048,
                       compute_dtype=None, multicore=False):
    """x: (B, 4) float32. Returns softmax probabilities (B, 2) float32."""
    if compute_dtype is None:
        compute_dtype = w_slab.dtype
    B = x.shape[0]

    # Guard / align the batch tile to the 128-lane axis.
    batch_tile = max(128, _round_up(int(batch_tile), 128))
    if B <= batch_tile:
        tb = B                    # single full-extent block: no batch padding at all
        b_pad = B
    else:
        tb = batch_tile
        b_pad = _round_up(B, tb)

    # One wrapper-side layout op: transpose to feature-major (and pad batch only
    # if strictly needed).  No (B, 8) whole-batch pad copy.
    xt = x.T.astype(compute_dtype)                           # (4, B)
    if b_pad != B:
        xt = jnp.zeros((INPUT_DIM, b_pad), compute_dtype).at[:, :B].set(xt)

    grid = (b_pad // tb,)
    if multicore:
        # v7x: real 2-TensorCore split of the batch axis.
        dim_sems = (pltpu.CORE_PARALLEL,)
    else:
        dim_sems = ("parallel",)

    flops = 2 * b_pad * (INPUT_DIM * HIDDEN + HIDDEN * HIDDEN + HIDDEN)
    bytes_accessed = (b_pad * INPUT_DIM * jnp.dtype(compute_dtype).itemsize
                      + _SLAB_ROWS * HIDDEN * jnp.dtype(w_slab.dtype).itemsize
                      + HIDDEN * _PCOLS * 4
                      + b_pad * OUTPUT_DIM * 4)

    out = pl.pallas_call(
        functools.partial(policy_net_kernel, compute_dtype=compute_dtype),
        out_shape=jax.ShapeDtypeStruct((OUTPUT_DIM, b_pad), jnp.float32),
        grid=grid,
        in_specs=[
            pl.BlockSpec((INPUT_DIM, tb), lambda i: (0, i)),       # x: streamed per tile
            pl.BlockSpec((_SLAB_ROWS, HIDDEN), lambda i: (0, 0)),  # weights: VMEM-resident
            pl.BlockSpec((HIDDEN, _PCOLS), lambda i: (0, 0)),      # W1+biases: VMEM-resident
        ],
        out_specs=pl.BlockSpec((OUTPUT_DIM, tb), lambda i: (0, i)),
        compiler_params=pltpu.CompilerParams(dimension_semantics=dim_sems),
        cost_estimate=pl.CostEstimate(flops=flops,
                                      transcendentals=b_pad,
                                      bytes_accessed=bytes_accessed),
    )(xt, w_slab, p_small)                                   # (2, b_pad)

    return out[:, :B].T                                      # (B, 2)


def init_policy_net_params(key, input_dim=INPUT_DIM, hidden=HIDDEN,
                           output=OUTPUT_DIM):
    """PyTorch-style Linear init (uniform +/- 1/sqrt(fan_in)); weights [out, in]."""
    ks = jax.random.split(key, 6)

    def uinit(k, shape, fan_in):
        bound = 1.0 / jnp.sqrt(float(fan_in))
        return jax.random.uniform(k, shape, jnp.float32, -bound, bound)

    return {
        "w1": uinit(ks[0], (hidden, input_dim), input_dim),
        "b1": uinit(ks[1], (hidden,), input_dim),
        "w2": uinit(ks[2], (hidden, hidden), hidden),
        "b2": uinit(ks[3], (hidden,), hidden),
        "w3": uinit(ks[4], (output, hidden), hidden),
        "b3": uinit(ks[5], (output,), hidden),
    }


def _reference_forward(x, p):
    """Pure-JAX reference identical to the PyTorch forward."""
    h1 = jax.nn.relu(x @ p["w1"].T + p["b1"])
    h2 = jax.nn.relu(h1 @ p["w2"].T + p["b2"])
    return jax.nn.softmax(h2 @ p["w3"].T + p["b3"], axis=-1)


if __name__ == "__main__":
    key = jax.random.PRNGKey(0)
    k_params, k_x, k_x2 = jax.random.split(key, 3)

    params = init_policy_net_params(k_params)

    # Small shape implied by the module: batch=2, input=4.
    B = 2
    x = jax.random.normal(k_x, (B, INPUT_DIM), jnp.float32)
    ref = _reference_forward(x, params)

    # f32 weights: matches the PyTorch module numerics tightly.
    w_slab32, p_small32 = pack_policy_net_params(params, weight_dtype=jnp.float32)
    out32 = jax.block_until_ready(policy_net_forward(x, w_slab32, p_small32))
    assert out32.shape == (B, OUTPUT_DIM)
    assert jnp.allclose(out32, ref, atol=2e-5, rtol=2e-5)
    assert jnp.allclose(jnp.sum(out32, axis=-1), jnp.ones((B,)), atol=1e-5)

    # Default bf16 weights (MXU-native on v6e/v7x): looser tolerance vs f32 ref.
    w_slab16, p_small16 = pack_policy_net_params(params)
    out16 = jax.block_until_ready(policy_net_forward(x, w_slab16, p_small16))
    assert out16.shape == (B, OUTPUT_DIM)
    assert jnp.allclose(out16, ref, atol=5e-2, rtol=5e-2)
    assert jnp.allclose(jnp.sum(out16, axis=-1), jnp.ones((B,)), atol=1e-3)

    # Exercise the multi-tile / padded-batch path (grid > 1).
    B2 = 300
    x2 = jax.random.normal(k_x2, (B2, INPUT_DIM), jnp.float32)
    out_big = jax.block_until_ready(
        policy_net_forward(x2, w_slab32, p_small32, batch_tile=128))
    assert out_big.shape == (B2, OUTPUT_DIM)
    assert jnp.allclose(out_big, _reference_forward(x2, params),
                        atol=2e-5, rtol=2e-5)

    print("KERNEL_OK")
</pallas_src>

<mosaic_0001>
module attributes {stable_mosaic.version = 11 : i64} {
  func.func @policy_net_kernel(%arg0: i32, %arg1: memref<4x2xf32, #tpu.memory_space<vmem>>, %arg2: memref<72x64xf32, #tpu.memory_space<vmem>>, %arg3: memref<64x8xf32, #tpu.memory_space<vmem>>, %arg4: memref<2x2xf32, #tpu.memory_space<vmem>>) attributes {dimension_semantics = [#tpu.dimension_semantics<parallel>], iteration_bounds = array<i64: 1>, scalar_prefetch = 0 : i64, scratch_operands = 0 : i64, tpu.core_type = #tpu.core_type<tc>, window_params = [{transform_indices = @transform_0, window_bounds = array<i64: 4, 2>}, {pipeline_mode = #tpu.pipeline_mode<synchronous>, transform_indices = @transform_1, window_bounds = array<i64: 72, 64>}, {pipeline_mode = #tpu.pipeline_mode<synchronous>, transform_indices = @transform_2, window_bounds = array<i64: 64, 8>}, {transform_indices = @transform_3, window_bounds = array<i64: 2, 2>}]} {
    %c0 = arith.constant 0 : index
    %c0_0 = arith.constant 0 : index
    %0 = vector.load %arg1[%c0, %c0_0] : memref<4x2xf32, #tpu.memory_space<vmem>>, vector<4x2xf32>
    %c0_1 = arith.constant 0 : index
    %c0_2 = arith.constant 0 : index
    %1 = vector.load %arg3[%c0_1, %c0_2] : memref<64x8xf32, #tpu.memory_space<vmem>>, vector<64x4xf32>
    %c0_3 = arith.constant 0 : index
    %c4 = arith.constant 4 : index
    %2 = vector.load %arg3[%c0_3, %c4] : memref<64x8xf32, #tpu.memory_space<vmem>>, vector<64x1xf32>
    %c0_4 = arith.constant 0 : index
    %c5 = arith.constant 5 : index
    %3 = vector.load %arg3[%c0_4, %c5] : memref<64x8xf32, #tpu.memory_space<vmem>>, vector<64x1xf32>
    %c0_5 = arith.constant 0 : index
    %c6 = arith.constant 6 : index
    %4 = vector.load %arg3[%c0_5, %c6] : memref<64x8xf32, #tpu.memory_space<vmem>>, vector<1x1xf32>
    %cst = arith.constant dense<0.000000e+00> : vector<64x2xf32>
    %5 = tpu.matmul %1, %0, %cst {dimension_numbers = #tpu.dot_dimension_numbers<[1], [0], [0], [1], [0, 0, 1, 1], [], []>} : vector<64x4xf32>, vector<4x2xf32>, vector<64x2xf32> -> vector<64x2xf32>
    %6 = vector.broadcast %2 : vector<64x1xf32> to vector<64x2xf32>
    %7 = arith.addf %5, %6 : vector<64x2xf32>
    %cst_6 = arith.constant 0.000000e+00 : f32
    %8 = vector.broadcast %cst_6 : f32 to vector<64x2xf32>
    %9 = arith.maximumf %7, %8 : vector<64x2xf32>
    %c0_7 = arith.constant 0 : index
    %c0_8 = arith.constant 0 : index
    %10 = vector.load %arg2[%c0_7, %c0_8] : memref<72x64xf32, #tpu.memory_space<vmem>>, vector<64x64xf32>
    %cst_9 = arith.constant dense<0.000000e+00> : vector<64x2xf32>
    %11 = tpu.matmul %10, %9, %cst_9 {dimension_numbers = #tpu.dot_dimension_numbers<[1], [0], [0], [1], [0, 0, 1, 1], [], []>} : vector<64x64xf32>, vector<64x2xf32>, vector<64x2xf32> -> vector<64x2xf32>
    %12 = vector.broadcast %3 : vector<64x1xf32> to vector<64x2xf32>
    %13 = arith.addf %11, %12 : vector<64x2xf32>
    %cst_10 = arith.constant 0.000000e+00 : f32
    %14 = vector.broadcast %cst_10 : f32 to vector<64x2xf32>
    %15 = arith.maximumf %13, %14 : vector<64x2xf32>
    %c64 = arith.constant 64 : index
    %c0_11 = arith.constant 0 : index
    %16 = vector.load %arg2[%c64, %c0_11] : memref<72x64xf32, #tpu.memory_space<vmem>>, vector<1x64xf32>
    %cst_12 = arith.constant dense<0.000000e+00> : vector<1x2xf32>
    %17 = tpu.matmul %16, %15, %cst_12 {dimension_numbers = #tpu.dot_dimension_numbers<[1], [0], [0], [1], [0, 0, 1, 1], [], []>} : vector<1x64xf32>, vector<64x2xf32>, vector<1x2xf32> -> vector<1x2xf32>
    %18 = vector.broadcast %4 : vector<1x1xf32> to vector<1x2xf32>
    %19 = arith.addf %17, %18 : vector<1x2xf32>
    %20 = arith.negf %19 : vector<1x2xf32>
    %21 = math.exp %20 : vector<1x2xf32>
    %cst_13 = arith.constant 1.000000e+00 : f32
    %22 = vector.broadcast %cst_13 : f32 to vector<1x2xf32>
    %23 = arith.addf %22, %21 : vector<1x2xf32>
    %24 = arith.divf %22, %23 : vector<1x2xf32>
    %cst_14 = arith.constant 1.000000e+00 : f32
    %25 = vector.broadcast %cst_14 : f32 to vector<1x2xf32>
    %26 = arith.subf %25, %24 : vector<1x2xf32>
    %27 = tpu.concatenate %26, %24 in 0 : vector<1x2xf32>, vector<1x2xf32> -> vector<2x2xf32>
    %c0_15 = arith.constant 0 : index
    %c0_16 = arith.constant 0 : index
    %28 = vector.load %arg4[%c0_15, %c0_16] : memref<2x2xf32, #tpu.memory_space<vmem>>, vector<2x2xf32>
    tpu.vector_store %arg4[%c0_15, %c0_16], %27 {strides = array<i32>} : memref<2x2xf32, #tpu.memory_space<vmem>>, vector<2x2xf32>,
    return
  }
  func.func @transform_0(%arg0: i32) -> (i32, i32) {
    %c0_i32 = arith.constant 0 : i32
    %c0_i32_0 = arith.constant 0 : i32
    return %c0_i32, %arg0 : i32, i32
  }
  func.func @transform_1(%arg0: i32) -> (i32, i32) {
    %c0_i32 = arith.constant 0 : i32
    %c0_i32_0 = arith.constant 0 : i32
    %c0_i32_1 = arith.constant 0 : i32
    return %c0_i32, %c0_i32_0 : i32, i32
  }
  func.func @transform_2(%arg0: i32) -> (i32, i32) {
    %c0_i32 = arith.constant 0 : i32
    %c0_i32_0 = arith.constant 0 : i32
    %c0_i32_1 = arith.constant 0 : i32
    return %c0_i32, %c0_i32_0 : i32, i32
  }
  func.func @transform_3(%arg0: i32) -> (i32, i32) {
    %c0_i32 = arith.constant 0 : i32
    %c0_i32_0 = arith.constant 0 : i32
    return %c0_i32, %arg0 : i32, i32
  }
}

</mosaic_0001>

<bundles_post_ra>
// kernel: tpu_custom_call.1
= control target key start
LH: loop header
LB: loop body
LE: loop exit
PB: predicated region body
PF: predicated region fallthrough
CT: control target
= control target key end

     0   :  { %vm82_vm0 = vcmask 1043456   ;;  %v391_v3 = vmov 4   ;;  %vm65_vm1 = vcmask 31744   ;;  %s497_s0 = inlined_call_operand.vmem [shape: f32[4,2], index: 0, kind: input, shape index: {}]   ;;  %s498_s1 = inlined_call_operand.vmem [shape: f32[72,64], index: 1, kind: input, shape index: {}]   ;;  %s499_s2 = inlined_call_operand.vmem [shape: f32[64,8], index: 2, kind: input, shape index: {}]   ;;  %s500_s3 = inlined_call_operand.hbm [shape: f32[2,2], index: 3, kind: output, shape index: {}]  }
   0x1   :  { %v15_v0 = vld [vmem:[%s497_s0] sm:$0xf]  ;;  %v21_v1 = vld [vmem:[%s499_s2 + $0x28] sm:$0xff]  ;;  %354 = vset.pattern.permute.xlu1 %v391_v3  ;;  %v23_v4 = vld [vmem:[%s499_s2 + $0x38] sm:$0xff]  ;;  %353 = vset.pattern.permute.xlu0 %v391_v3 }
   0x2   :  { %v424_v2 = vld [vmem:[%s499_s2] sm:$0xff]  ;;  %321 = vmatpush.msk.msra.mxu0 %vm82_vm0, %v15_v0  ;;  %52 = vperm.xlu1 %354, %v21_v1   ;;  %v22_v5 = vld [vmem:[%s499_s2 + $0x30] sm:$0xff] }
   0x3   :  { %322 = vmatmul.msk.f32.vlgmr.msra.gmra.mxu0 %vm65_vm1, %v424_v2  ;;  %340 = vmatpush.msk.msra.mxu2 %vm82_vm0, %v15_v0 }
   0x4   :  { %8 = vsyncpa [#allocation3], 0  ;;  %62 = vperm.xlu0 %353, %v23_v4   ;;  %328 = vmatmul.msk.f32.vlgmr.msra.gmra.mxu2 %vm65_vm1, %v22_v5  ;;  %v19_v6 = vld [vmem:[%s499_s2 + $0x18] sm:$0xff]  ;;  %v20_v7 = vld [vmem:[%s499_s2 + $0x20] sm:$0xff]  ;;  %v392_v22 = vmov 5   ;;  %vm175_vm2 = vcmask 523264  }
   0x5   :  { %355 = vset.pattern.permute.xlu2 %v391_v3  ;;  %v17_v8 = vld [vmem:[%s499_s2 + $0x8] sm:$0xff]  ;;  %v18_v9 = vld [vmem:[%s499_s2 + $0x10] sm:$0xff]  ;;  %v139_v43 = vld [vmem:[%s498_s1 + $0x20] sm:$0xff]  ;;  %v393_v57 = vmov 6   ;;  %s312_s23 = sshll.u32 %s500_s3, 4  ;;  %vm301_vm7 = vcmask 1040384   ;;  %s313_s23 = int_to_ptr.hbm [resolvable:$true] %s312_s23 }
   0x6   :  { %42 = vperm.xlu2 %355, %v19_v6   ;;  %v135_v44 = vld [vmem:[%s498_s1] sm:$0xff]  ;;  %v140_v45 = vld [vmem:[%s498_s1 + $0x28] sm:$0xff]  ;;  %v141_v47 = vld [vmem:[%s498_s1 + $0x30] sm:$0xff]  ;;  %vm303_vm8 = vcmask 9216  }
   0x7   :  { %v136_v46 = vld [vmem:[%s498_s1 + $0x8] sm:$0xff]  ;;  %v137_v48 = vld [vmem:[%s498_s1 + $0x10] sm:$0xff]  ;;  %v142_v49 = vld [vmem:[%s498_s1 + $0x38] sm:$0xff] }
   0x8   :  { %v138_v50 = vld [vmem:[%s498_s1 + $0x18] sm:$0xff]  ;;  %v24_v56 = vld [vmem:[%s499_s2] sm:$0x1] }
   0xa   :  { %47 = vperm.xlu1 %354, %v20_v7  }
   0xb   :  { %323 = vmatmul.msk.f32.gmra.mxu0 %vm65_vm1, %v17_v8 }
   0xc   :  { %57 = vperm.xlu0 %353, %v22_v5   ;;  %329 = vmatmul.msk.f32.gmra.mxu2 %vm65_vm1, %v23_v4 }
   0xe   :  { %37 = vperm.xlu2 %355, %v18_v9  }
  0x12   :  { %27 = vperm.xlu1 %354, %v424_v2  }
  0x13   :  { %324 = vmatmul.msk.f32.gmra.mxu0 %vm65_vm1, %v18_v9 }
  0x14   :  { %32 = vperm.xlu0 %353, %v17_v8  }
  0x16   :  { %356 = vset.pattern.permute.xlu2 %v392_v22 }
  0x17   :  { %172 = vperm.xlu2 %356, %v23_v4  }
  0x1a   :  { %358 = vset.pattern.permute.xlu1 %v392_v22 }
  0x1b   :  { %325 = vmatmul.msk.f32.gmra.mxu0 %vm65_vm1, %v19_v6  ;;  %164 = vperm.xlu1 %358, %v21_v1  }
  0x1c   :  { %357 = vset.pattern.permute.xlu0 %v392_v22 }
  0x1d   :  { %168 = vperm.xlu0 %357, %v22_v5  }
  0x1f   :  { %160 = vperm.xlu2 %356, %v20_v7  }
  0x23   :  { %326 = vmatmul.msk.f32.gmra.mxu0 %vm65_vm1, %v20_v7  ;;  %156 = vperm.xlu1 %358, %v19_v6  }
  0x25   :  { %148 = vperm.xlu0 %357, %v17_v8  }
  0x27   :  { %152 = vperm.xlu2 %356, %v18_v9  }
  0x2b   :  { %327 = vmatmul.msk.f32.gmra.mxu0 %vm65_vm1, %v21_v1  ;;  %144 = vperm.xlu1 %358, %v424_v2  }
  0x2d   :  { %360 = vset.pattern.permute.xlu0 %v393_v57 }
  0x2f   :  { %359 = vset.pattern.permute.xlu2 %v393_v57 }
  0x30   :  { %252 = vperm.xlu2 %359, %v24_v56  }
  0x60   :  { %v43_v24 = vpop.permute.xlu2 %42 }
  0x68   :  { %v38_v30 = vpop.permute.xlu2 %37 }
  0x71   :  { %v173_v55 = vpop.permute.xlu2 %172 }
  0x74   :  { %v53_v23 = vpop.permute.xlu1 %52 }
  0x76   :  { %v63_v11 = vpop.permute.xlu0 %62 }
  0x79   :  { %v161_v61 = vpop.permute.xlu2 %160 }
  0x7c   :  { %v48_v26 = vpop.permute.xlu1 %47 }
  0x7e   :  { %v58_v14 = vpop.permute.xlu0 %57 }
  0x80   :  { %v103_v10 = vpop.f32.mrf.mxu0 }
  0x81   :  { %v153_v8 = vpop.permute.xlu2 %152 }
  0x84   :  { %v28_v36 = vpop.permute.xlu1 %27 }
  0x85   :  { %v104_v39 = vadd.f32 %v103_v10, %v28_v36 }
  0x86   :  { %v33_v33 = vpop.permute.xlu0 %32 }
  0x87   :  { %v121_v13 = vpop.f32.mrf.mxu2  ;;  %v127_v42 = vmax.f32 %v104_v39, 0.0 }
  0x88   :  { %v106_v12 = vpop.f32.mrf.mxu0  ;;  %v122_v15 = vadd.f32 %v121_v13, %v58_v14 }
  0x89   :  { %v107_v37 = vadd.f32 %v106_v12, %v33_v33 }
  0x8a   :  { %v133_v19 = vmax.f32 %v122_v15, 0.0  ;;  %v253_v22 = vpop.permute.xlu2 %252 }
  0x8b   :  { %v128_v41 = vmax.f32 %v107_v37, 0.0 }
  0x8d   :  { %v165_v58 = vpop.permute.xlu1 %164 }
  0x8f   :  { %v124_v17 = vpop.f32.mrf.mxu2  ;;  %v169_v62 = vpop.permute.xlu0 %168 }
  0x90   :  { %v109_v16 = vpop.f32.mrf.mxu0  ;;  %v125_v18 = vadd.f32 %v124_v17, %v63_v11 }
  0x91   :  { %v110_v34 = vadd.f32 %v109_v16, %v38_v30 }
  0x92   :  { %v134_v20 = vmax.f32 %v125_v18, 0.0 }
  0x93   :  { %v129_v40 = vmax.f32 %v110_v34, 0.0 }
  0x94   :  { %208 = vmatpush.msra.mxu1 %v134_v20  ;;  %341 = vmatpush.msra.mxu3 %v134_v20 }
  0x95   :  { %v157_v63 = vpop.permute.xlu1 %156 }
  0x96   :  { %209 = vmatpush.msra.mxu1 %v133_v19  ;;  %342 = vmatpush.msra.mxu3 %v133_v19 }
  0x97   :  { %v149_v11 = vpop.permute.xlu0 %148 }
  0x98   :  { %v112_v21 = vpop.f32.mrf.mxu0 }
  0x99   :  { %v113_v31 = vadd.f32 %v112_v21, %v43_v24  ;;  %v249_v21 = vld [vmem:[%s498_s1 + $0x40] sm:$0x1]  ;;  %s394_s1 = smov [#allocation2]  }
  0x9a   :  { %s310_s20 = sshll.u32 %s394_s1, 4  ;;  %s311_s20 = int_to_ptr.vmem [resolvable:$true] %s310_s20 }
  0x9b   :  { %v130_v38 = vmax.f32 %v113_v31, 0.0 }
  0x9d   :  { %v145_v14 = vpop.permute.xlu1 %144 }
  0xa0   :  { %v115_v25 = vpop.f32.mrf.mxu0 }
  0xa1   :  { %v116_v28 = vadd.f32 %v115_v25, %v48_v26 }
  0xa3   :  { %v131_v35 = vmax.f32 %v116_v28, 0.0 }
  0xa8   :  { %v118_v27 = vpop.f32.mrf.mxu0 }
  0xa9   :  { %v119_v29 = vadd.f32 %v118_v27, %v53_v23 }
  0xab   :  { %v132_v32 = vmax.f32 %v119_v29, 0.0 }
  0xad   :  { %210 = vmatpush.msra.mxu1 %v132_v32  ;;  %343 = vmatpush.msra.mxu3 %v132_v32 }
  0xaf   :  { %211 = vmatpush.msra.mxu1 %v131_v35  ;;  %344 = vmatpush.msra.mxu3 %v131_v35 }
  0xb1   :  { %212 = vmatpush.msra.mxu1 %v130_v38  ;;  %345 = vmatpush.msra.mxu3 %v130_v38 }
  0xb3   :  { %213 = vmatpush.msra.mxu1 %v129_v40  ;;  %346 = vmatpush.msra.mxu3 %v129_v40 }
  0xb5   :  { %214 = vmatpush.msra.mxu1 %v128_v41  ;;  %347 = vmatpush.msra.mxu3 %v128_v41 }
  0xb7   :  { %215 = vmatpush.msra.mxu1 %v127_v42  ;;  %348 = vmatpush.msra.mxu3 %v127_v42 }
  0xb8   :  { %334 = vmatmul.msk.f32.vlgmr.msra.gmra.mxu3 %vm175_vm2, %v139_v43  ;;  %330 = vmatmul.msk.f32.vlgmr.msra.gmra.mxu1 %vm175_vm2, %v135_v44 }
  0xc0   :  { %335 = vmatmul.msk.f32.gmra.mxu3 %vm175_vm2, %v140_v45  ;;  %331 = vmatmul.msk.f32.gmra.mxu1 %vm175_vm2, %v136_v46 }
  0xc8   :  { %336 = vmatmul.msk.f32.gmra.mxu3 %vm175_vm2, %v141_v47  ;;  %332 = vmatmul.msk.f32.gmra.mxu1 %vm175_vm2, %v137_v48 }
  0xd0   :  { %337 = vmatmul.msk.f32.gmra.mxu3 %vm175_vm2, %v142_v49  ;;  %333 = vmatmul.msk.f32.gmra.mxu1 %vm175_vm2, %v138_v50 }
 0x135   :  { %v217_v51 = vpop.f32.mrf.mxu1 }
 0x136   :  { %v218_v17 = vadd.f32 %v217_v51, %v145_v14 }
 0x138   :  { %v241_v20 = vmax.f32 %v218_v17, 0.0 }
 0x13b   :  { %v229_v52 = vpop.f32.mrf.mxu3 }
 0x13c   :  { %v230_v6 = vadd.f32 %v229_v52, %v161_v61 }
 0x13d   :  { %v220_v53 = vpop.f32.mrf.mxu1 }
 0x13e   :  { %v245_v12 = vmax.f32 %v230_v6, 0.0  ;;  %v221_v15 = vadd.f32 %v220_v53, %v149_v11 }
 0x140   :  { %v242_v19 = vmax.f32 %v221_v15, 0.0 }
 0x143   :  { %v232_v54 = vpop.f32.mrf.mxu3 }
 0x144   :  { %v233_v3 = vadd.f32 %v232_v54, %v165_v58 }
 0x145   :  { %v223_v60 = vpop.f32.mrf.mxu1 }
 0x146   :  { %v246_v9 = vmax.f32 %v233_v3, 0.0  ;;  %v224_v13 = vadd.f32 %v223_v60, %v153_v8 }
 0x148   :  { %v243_v18 = vmax.f32 %v224_v13, 0.0 }
 0x14b   :  { %v235_v59 = vpop.f32.mrf.mxu3 }
 0x14c   :  { %v236_v1 = vadd.f32 %v235_v59, %v169_v62 }
 0x14d   :  { %v226_v5 = vpop.f32.mrf.mxu1 }
 0x14e   :  { %v247_v7 = vmax.f32 %v236_v1, 0.0  ;;  %v227_v10 = vadd.f32 %v226_v5, %v157_v63 }
 0x150   :  { %v244_v16 = vmax.f32 %v227_v10, 0.0 }
 0x153   :  { %v238_v0 = vpop.f32.mrf.mxu3 }
 0x154   :  { %v239_v2 = vadd.f32 %v238_v0, %v173_v55 }
 0x156   :  { %v248_v4 = vmax.f32 %v239_v2, 0.0 }
 0x158   :  { %266 = vmatpush.msrb.mxu2 %v248_v4 }
 0x15a   :  { %267 = vmatpush.msrb.mxu2 %v247_v7 }
 0x15c   :  { %268 = vmatpush.msrb.mxu2 %v246_v9 }
 0x15e   :  { %269 = vmatpush.msrb.mxu2 %v245_v12 }
 0x160   :  { %270 = vmatpush.msrb.mxu2 %v244_v16 }
 0x162   :  { %271 = vmatpush.msrb.mxu2 %v243_v18 }
 0x164   :  { %272 = vmatpush.msrb.mxu2 %v242_v19 }
 0x166   :  { %273 = vmatpush.msrb.mxu2 %v241_v20 }
 0x167   :  { %338 = vmatmul.msk.f32.vlgmr.msrb.gmra.mxu2 %vm175_vm2, %v249_v21 }
 0x1ea   :  { %v275_v23 = vpop.f32.mrf.mxu2 }
 0x1eb   :  { %v276_v24 = vadd.f32 %v275_v23, %v253_v22 }
 0x1ed   :  { %v339_v25 = vmul.f32 -1.442695, %v276_v24 }
 0x1ef   :  { %361 = vpow2.f32 %v339_v25 }
 0x1f5   :  { %v362_v26 = vpop.eup %361 }
 0x1f6   :  { %v281_v27 = vadd.f32 1.0, %v362_v26 }
 0x1f8   :  { %363 = vrcp.f32 %v281_v27  ;;  %v293_v31 = vand.u32 2147483648, %v281_v27  ;;  %v291_v33 = vand.u32 2147483647, %v281_v27  ;;  %vm287_vm4 = vweird.f32 %v281_v27 }
 0x1fa   :  { %v294_v35 = vor.u32 1.1754944e-38, %v293_v31  ;;  %vm292_vm6 = vcmp.eq.f32.partialorder %v291_v33, 8.507059e+37 }
 0x1fe   :  { %v364_v28 = vpop.eup %363 }
 0x1ff   :  { %v283_v29 = vmul.f32 %v364_v28, %v281_v27  ;;  %vm288_vm3 = vweird.f32 %v364_v28 }
 0x200   :  { %vm289_vm5 = vmor %vm287_vm4, %vm288_vm3 }
 0x201   :  { %v284_v30 = vsub.f32 1.0, %v283_v29 }
 0x203   :  { %v285_v32 = vmul.f32 %v364_v28, %v284_v30 }
 0x205   :  { %v286_v34 = vadd.f32 %v364_v28, %v285_v32 }
 0x207   :  { %v290_v36 = vsel %vm289_vm5, %v364_v28, %v286_v34 }
 0x208   :  { %v295_v37 = vsel %vm292_vm6, %v294_v35, %v290_v36 }
 0x209   :  { %v297_v38 = vsub.f32 1.0, %v295_v37  ;;  %v299_v39 = vrot.slane %v295_v37, 7 }
 0x20b   :  { %v302_v40 = vsel %vm301_vm7, %v297_v38, %v299_v39 }
 0x20c   :  { %304 = vst.msk [vmem:[#allocation2] sm:$0x3] %vm303_vm8, %v302_v40 }
 0x20d   :  { %315 = dma.vmem_to_hbm [thread:$0]  %s311_s20, 32, %s313_s23, [#allocation3]  }
 0x20e   :  { %389 = dma.done.wait [#allocation3], 32  }
 0x20f   :  { %390 = vsyncadd [#allocation3], 4294967264 }
 0x210   :  { %320 = vsyncpa [#allocation3], 1 }

</bundles_post_ra>
